<compile_context>
chip_gen: v5e
topology: v5e:2x2
jax: 0.10.0
libtpu: 0.0.40
codegen_flags: <defaults>
</compile_context>

<pallas_src>
from dataclasses import dataclass

import jax
import jax.numpy as jnp
from jax.experimental import pallas as pl
from jax.experimental.pallas import tpu as pltpu


def _round_up(v, m):
    return (v + m - 1) // m * m


def _sublane_multiple(dtype):
    """Minimum second-minor tile multiple for a dtype (packed sublanes)."""
    itemsize = jnp.dtype(dtype).itemsize
    if itemsize >= 4:
        return 8
    if itemsize == 2:
        return 16
    return 32


def _vmem_budget_bytes():
    """Usable VMEM budget for this TPU generation (physical minus headroom)."""
    try:
        phys = int(pltpu.get_tpu_info().vmem_capacity_bytes)
    except Exception:
        phys = 64 * 1024 * 1024  # conservative default (v7x per-TC VMEM)
    # Leave headroom for compiler-managed temporaries; never ask for >100 MiB.
    return max(24 * 1024 * 1024, min(phys - 8 * 1024 * 1024, 100 * 1024 * 1024))


# --------------------------------------------------------------------------- #
# Weight packing (do once, cache the result)                                  #
# --------------------------------------------------------------------------- #
@dataclass(frozen=True)
class PackedSwiGluWeights:
    w13: jax.Array   # [d_pad, n_kt * 2 * tile_h]  fused [W1 | W3] hidden chunks
    w2t: jax.Array   # [h_pad, d_pad]              transposed, padded W2
    n_emb: int
    hidden: int
    d_pad: int
    h_pad: int
    tile_h: int
    n_kt: int


def pack_swiglu_weights(w1, w2, w3, *, compute_dtype=None, tile_h=None):
    """Pad / transpose / fuse the SwiGLU weights once (hoisted out of forward).

    w1 : [hidden, n_emb]  (PyTorch nn.Linear layout: out x in)
    w2 : [n_emb, hidden]
    w3 : [hidden, n_emb]
    """
    hidden, n_emb = w1.shape
    assert w2.shape == (n_emb, hidden) and w3.shape == (hidden, n_emb)
    wdtype = jnp.dtype(compute_dtype) if compute_dtype is not None else jnp.dtype(w1.dtype)
    w_itemsize = wdtype.itemsize

    d_pad = _round_up(n_emb, 128)
    budget = _vmem_budget_bytes()

    if tile_h is None:
        h_full = _round_up(hidden, 128)
        # Double-buffered footprint of the full fused weights.
        resident_bytes = 2 * (d_pad * 2 * h_full + h_full * d_pad) * w_itemsize
        if resident_bytes <= budget // 3:
            # Small model: keep the whole weight set resident in VMEM
            # (constant index_map -> DMA'd once, never re-streamed per tile).
            tile_h = h_full
        elif d_pad >= 4096 and budget <= 72 * 1024 * 1024:
            # v7x-style small VMEM + large embedding: halve the weight slabs.
            tile_h = 256
        else:
            tile_h = 512
    tile_h = min(_round_up(tile_h, 128), _round_up(hidden, 128))
    h_pad = _round_up(hidden, tile_h)
    n_kt = h_pad // tile_h

    # Pad + transpose to [in, out]; zero padding keeps the math exact
    # (gated = silu(0) * 0 = 0 in padded hidden columns).
    w1t = jnp.zeros((d_pad, h_pad), wdtype).at[:n_emb, :hidden].set(w1.T.astype(wdtype))
    w3t = jnp.zeros((d_pad, h_pad), wdtype).at[:n_emb, :hidden].set(w3.T.astype(wdtype))
    w2t = jnp.zeros((h_pad, d_pad), wdtype).at[:hidden, :n_emb].set(w2.T.astype(wdtype))

    # Fuse W1 | W3 per hidden chunk: chunk k occupies columns
    # [k*2*tile_h : (k+1)*2*tile_h] = [w1t chunk k | w3t chunk k].
    w13 = jnp.concatenate(
        [w1t.reshape(d_pad, n_kt, tile_h), w3t.reshape(d_pad, n_kt, tile_h)],
        axis=-1,
    ).reshape(d_pad, n_kt * 2 * tile_h)

    return PackedSwiGluWeights(w13=w13, w2t=w2t, n_emb=n_emb, hidden=hidden,
                               d_pad=d_pad, h_pad=h_pad, tile_h=tile_h, n_kt=n_kt)


# --------------------------------------------------------------------------- #
# Kernel                                                                      #
# --------------------------------------------------------------------------- #
def _swiglu_kernel(x_ref, w13_ref, w2_ref, o_ref, acc_ref):
    # x_ref   : [tile_m, d_pad]        token tile (resident across k)
    # w13_ref : [d_pad, 2*tile_h]      fused [W1 | W3] chunk for this k
    # w2_ref  : [tile_h, d_pad]        W2 chunk for this k
    # o_ref   : [tile_m, d_pad]        output tile (resident across k)
    # acc_ref : [tile_m, d_pad] f32    accumulator scratch
    k = pl.program_id(1)
    tile_h = w2_ref.shape[0]

    @pl.when(k == 0)
    def _():
        acc_ref[...] = jnp.zeros_like(acc_ref)

    x = x_ref[...]
    # One fused MXU pass for both up-projections, f32 accumulation.
    h = jnp.dot(x, w13_ref[...], preferred_element_type=jnp.float32)
    h1 = h[:, :tile_h]
    h3 = h[:, tile_h:]
    gated = (h1 * jax.nn.sigmoid(h1)) * h3       # SiLU gate (VPU + EUP)

    # Partial down-projection for this hidden chunk, accumulated in f32.
    acc_ref[...] += jnp.dot(gated.astype(w2_ref.dtype), w2_ref[...],
                            preferred_element_type=jnp.float32)

    @pl.when(k == pl.num_programs(1) - 1)
    def _():
        o_ref[...] = acc_ref[...].astype(o_ref.dtype)


# --------------------------------------------------------------------------- #
# Forward wrappers                                                            #
# --------------------------------------------------------------------------- #
def swiglu_pallas_packed(x, packed: PackedSwiGluWeights, *, tile_m=None,
                         compute_dtype=None):
    """SwiGLU forward with pre-packed weights.  x: [..., n_emb] -> [..., n_emb]."""
    *lead, n_emb = x.shape
    assert n_emb == packed.n_emb, "embedding dim mismatch with packed weights"
    out_dtype = x.dtype
    cdtype = (jnp.dtype(compute_dtype) if compute_dtype is not None
              else jnp.dtype(packed.w13.dtype))

    M = 1
    for s in lead:
        M *= s
    M = max(M, 1)
    x2d = x.reshape(M, n_emb)
    if x2d.dtype != cdtype:
        x2d = x2d.astype(cdtype)

    d_pad, h_pad = packed.d_pad, packed.h_pad
    tile_h, n_kt = packed.tile_h, packed.n_kt
    in_itemsize = cdtype.itemsize
    out_itemsize = jnp.dtype(out_dtype).itemsize
    w_itemsize = jnp.dtype(packed.w13.dtype).itemsize
    sub = _sublane_multiple(cdtype)
    budget = _vmem_budget_bytes()

    # Double-buffered fused weight slabs for one hidden chunk.
    weight_bytes = 2 * (d_pad * 2 * tile_h + tile_h * d_pad) * w_itemsize

    def vmem_need(tm):
        return (weight_bytes
                + 2 * tm * d_pad * in_itemsize      # x tile, double-buffered
                + 2 * tm * d_pad * out_itemsize     # output tile, double-buffered
                + tm * d_pad * 4                    # f32 accumulator scratch
                + 2 * tm * 2 * tile_h * 4)          # f32 h + gated temporaries

    # ---- tile_m: dtype-aware rounding, VMEM-constrained, default 512 --------
    if tile_m is None:
        tile_m = 512
    tile_m = _round_up(tile_m, sub)
    tile_m = min(tile_m, _round_up(M, sub))
    while tile_m > sub and vmem_need(tile_m) > budget:
        tile_m = _round_up(tile_m // 2, sub)

    m_pad = _round_up(M, tile_m)
    n_mt = m_pad // tile_m
    # Megacore: when the weights are fully resident (single k chunk, so no
    # re-streaming penalty), prefer >= 2 token tiles so the "parallel" axis can
    # be split across TensorCores (v7x has 2 TCs per chip).
    if n_mt == 1 and n_kt == 1:
        half = _round_up(max(tile_m // 2, sub), sub)
        if half < tile_m:
            tile_m = half
            m_pad = _round_up(M, tile_m)
            n_mt = m_pad // tile_m

    # ---- activations: skip the padding copy when already aligned ------------
    if m_pad == M and d_pad == n_emb:
        xp = x2d
    else:
        xp = jnp.zeros((m_pad, d_pad), cdtype).at[:M, :n_emb].set(x2d)

    # ---- VMEM limit (never above the generation's physical budget) ----------
    need = vmem_need(tile_m)
    vmem_limit = int(min(budget, max(need * 5 // 4, 32 * 1024 * 1024)))

    # ---- cost estimate (advisory, for XLA scheduling) ------------------------
    weight_streams = 1 if n_kt == 1 else n_mt
    flops = 6 * m_pad * d_pad * h_pad
    bytes_accessed = int(
        xp.size * in_itemsize
        + weight_streams * (packed.w13.size + packed.w2t.size) * w_itemsize
        + m_pad * d_pad * out_itemsize)
    cost = pl.CostEstimate(flops=flops, transcendentals=m_pad * h_pad,
                           bytes_accessed=bytes_accessed)

    # NOTE (v5e): if a trace shows exposed weight DMA after retuning tiles,
    # pipeline_mode=pl.Buffered(3) on the weight specs can hide the jitter at
    # the cost of one extra weight slab of VMEM (not advisable on v7x).
    out2d = pl.pallas_call(
        _swiglu_kernel,
        out_shape=jax.ShapeDtypeStruct((m_pad, d_pad), out_dtype),
        grid_spec=pltpu.PrefetchScalarGridSpec(
            num_scalar_prefetch=0,
            grid=(n_mt, n_kt),
            in_specs=[
                # token tile: marches over i, constant across the reduction k
                pl.BlockSpec((tile_m, d_pad), lambda i, k: (i, 0)),
                # fused [W1 | W3] hidden chunk (constant when n_kt == 1 -> resident)
                pl.BlockSpec((d_pad, 2 * tile_h), lambda i, k: (0, k)),
                # W2 hidden chunk
                pl.BlockSpec((tile_h, d_pad), lambda i, k: (k, 0)),
            ],
            # same output block across k -> accumulator pattern
            out_specs=pl.BlockSpec((tile_m, d_pad), lambda i, k: (i, 0)),
            scratch_shapes=[pltpu.VMEM((tile_m, d_pad), jnp.float32)],
        ),
        compiler_params=pltpu.CompilerParams(
            dimension_semantics=("parallel", "arbitrary"),
            vmem_limit_bytes=vmem_limit,
        ),
        cost_estimate=cost,
    )(xp, packed.w13, packed.w2t)

    if m_pad != M or d_pad != n_emb:
        out2d = out2d[:M, :n_emb]
    return out2d.reshape(*lead, n_emb)


def swiglu_pallas(x, w1, w2, w3, *, compute_dtype=None, tile_m=None, tile_h=None):
    """Convenience wrapper (packs weights per call; prefer caching the pack)."""
    packed = pack_swiglu_weights(w1, w2, w3, compute_dtype=compute_dtype,
                                 tile_h=tile_h)
    return swiglu_pallas_packed(x, packed, tile_m=tile_m,
                                compute_dtype=compute_dtype)


def _reference_swiglu(x, w1, w2, w3):
    h1 = jnp.einsum("btd,hd->bth", x, w1)
    h3 = jnp.einsum("btd,hd->bth", x, w3)
    gated = (h1 * jax.nn.sigmoid(h1)) * h3
    return jnp.einsum("bth,dh->btd", gated, w2)


if __name__ == "__main__":
    # config: n_emb=32, multiple_of=32  ->  hidden_dim = 96
    n_emb = 32
    multiple_of = 32
    hidden_dim = 4 * n_emb
    hidden_dim = int(2 * hidden_dim / 3)
    hidden_dim = multiple_of * ((hidden_dim + multiple_of - 1) // multiple_of)

    B, T = 2, 8

    key = jax.random.PRNGKey(0)
    kx, k1, k2, k3 = jax.random.split(key, 4)

    x = jax.random.normal(kx, (B, T, n_emb), dtype=jnp.float32)
    # nn.Linear(in, out) weight shape is (out, in)
    w1 = jax.random.normal(k1, (hidden_dim, n_emb), dtype=jnp.float32) * 0.05
    w2 = jax.random.normal(k2, (n_emb, hidden_dim), dtype=jnp.float32) * 0.05
    w3 = jax.random.normal(k3, (hidden_dim, n_emb), dtype=jnp.float32) * 0.05

    ref = _reference_swiglu(x, w1, w2, w3)

    # ---- f32 path: pack once, reuse across calls -----------------------------
    packed_f32 = pack_swiglu_weights(w1, w2, w3)
    packed_f32 = jax.tree_util.tree_map(jax.block_until_ready, (packed_f32.w13,
                                                                packed_f32.w2t)) and packed_f32
    out = swiglu_pallas_packed(x, packed_f32)
    out = jax.block_until_ready(out)
    assert out.shape == (B, T, n_emb)
    assert jnp.allclose(out, ref, atol=1e-4, rtol=1e-4), "f32 mismatch vs reference"

    # ---- bf16 compute path (f32 accumulation in-kernel) ----------------------
    packed_bf16 = pack_swiglu_weights(w1, w2, w3, compute_dtype=jnp.bfloat16)
    out_bf16 = swiglu_pallas_packed(x, packed_bf16, compute_dtype=jnp.bfloat16)
    out_bf16 = jax.block_until_ready(out_bf16)
    assert out_bf16.shape == (B, T, n_emb)
    assert bool(jnp.all(jnp.isfinite(out_bf16)))
    assert jnp.allclose(out_bf16, ref, atol=2e-2, rtol=2e-1), "bf16 mismatch vs reference"

    print("KERNEL_OK")
</pallas_src>

<mosaic_0001>
module attributes {stable_mosaic.version = 11 : i64} {
  func.func @_swiglu_kernel(%arg0: i32, %arg1: i32, %arg2: memref<8x128xf32, #tpu.memory_space<vmem>>, %arg3: memref<128x256xf32, #tpu.memory_space<vmem>>, %arg4: memref<128x128xf32, #tpu.memory_space<vmem>>, %arg5: memref<8x128xf32, #tpu.memory_space<vmem>>, %arg6: memref<8x128xf32, #tpu.memory_space<vmem>>) attributes {dimension_semantics = [#tpu.dimension_semantics<parallel>, #tpu.dimension_semantics<arbitrary>], iteration_bounds = array<i64: 2, 1>, scalar_prefetch = 0 : i64, scratch_operands = 1 : i64, tpu.core_type = #tpu.core_type<tc>, window_params = [{transform_indices = @transform_0, window_bounds = array<i64: 8, 128>}, {transform_indices = @transform_1, window_bounds = array<i64: 128, 256>}, {transform_indices = @transform_2, window_bounds = array<i64: 128, 128>}, {transform_indices = @transform_3, window_bounds = array<i64: 8, 128>}]} {
    %c0_i32 = arith.constant 0 : i32
    %0 = arith.cmpi eq, %arg1, %c0_i32 : i32
    %1 = arith.extui %0 : i1 to i32
    %c0_i32_0 = arith.constant 0 : i32
    %2 = arith.cmpi ne, %1, %c0_i32_0 : i32
    scf.if %2 {
      %cst_14 = arith.constant 0.000000e+00 : f32
      %23 = vector.broadcast %cst_14 : f32 to vector<8x128xf32>
      %c0_15 = arith.constant 0 : index
      %c0_16 = arith.constant 0 : index
      %24 = vector.load %arg6[%c0_15, %c0_16] : memref<8x128xf32, #tpu.memory_space<vmem>>, vector<8x128xf32>
      tpu.vector_store %arg6[%c0_15, %c0_16], %23 {strides = array<i32>} : memref<8x128xf32, #tpu.memory_space<vmem>>, vector<8x128xf32>,
    } else {
    }
    %c0 = arith.constant 0 : index
    %c0_1 = arith.constant 0 : index
    %3 = vector.load %arg2[%c0, %c0_1] : memref<8x128xf32, #tpu.memory_space<vmem>>, vector<8x128xf32>
    %c0_2 = arith.constant 0 : index
    %c0_3 = arith.constant 0 : index
    %4 = vector.load %arg3[%c0_2, %c0_3] : memref<128x256xf32, #tpu.memory_space<vmem>>, vector<128x256xf32>
    %cst = arith.constant dense<0.000000e+00> : vector<8x256xf32>
    %5 = tpu.matmul %3, %4, %cst {dimension_numbers = #tpu.dot_dimension_numbers<[1], [0], [0], [1], [0, 0, 1, 1], [], []>} : vector<8x128xf32>, vector<128x256xf32>, vector<8x256xf32> -> vector<8x256xf32>
    %6 = vector.extract_strided_slice %5 {offsets = [0, 0], sizes = [8, 128], strides = [1, 1]} : vector<8x256xf32> to vector<8x128xf32>
    %7 = vector.extract_strided_slice %5 {offsets = [0, 128], sizes = [8, 128], strides = [1, 1]} : vector<8x256xf32> to vector<8x128xf32>
    %8 = arith.negf %6 : vector<8x128xf32>
    %9 = math.exp %8 : vector<8x128xf32>
    %cst_4 = arith.constant 1.000000e+00 : f32
    %10 = vector.broadcast %cst_4 : f32 to vector<8x128xf32>
    %11 = arith.addf %10, %9 : vector<8x128xf32>
    %12 = arith.divf %10, %11 : vector<8x128xf32>
    %13 = arith.mulf %6, %12 : vector<8x128xf32>
    %14 = arith.mulf %13, %7 : vector<8x128xf32>
    %c0_5 = arith.constant 0 : index
    %c0_6 = arith.constant 0 : index
    %15 = vector.load %arg6[%c0_5, %c0_6] : memref<8x128xf32, #tpu.memory_space<vmem>>, vector<8x128xf32>
    %c0_7 = arith.constant 0 : index
    %c0_8 = arith.constant 0 : index
    %16 = vector.load %arg4[%c0_7, %c0_8] : memref<128x128xf32, #tpu.memory_space<vmem>>, vector<128x128xf32>
    %cst_9 = arith.constant dense<0.000000e+00> : vector<8x128xf32>
    %17 = tpu.matmul %14, %16, %cst_9 {dimension_numbers = #tpu.dot_dimension_numbers<[1], [0], [0], [1], [0, 0, 1, 1], [], []>} : vector<8x128xf32>, vector<128x128xf32>, vector<8x128xf32> -> vector<8x128xf32>
    %18 = arith.addf %15, %17 : vector<8x128xf32>
    %c0_10 = arith.constant 0 : index
    %c0_11 = arith.constant 0 : index
    %19 = vector.load %arg6[%c0_10, %c0_11] : memref<8x128xf32, #tpu.memory_space<vmem>>, vector<8x128xf32>
    tpu.vector_store %arg6[%c0_10, %c0_11], %18 {strides = array<i32>} : memref<8x128xf32, #tpu.memory_space<vmem>>, vector<8x128xf32>,
    %c0_i32_12 = arith.constant 0 : i32
    %20 = arith.cmpi eq, %arg1, %c0_i32_12 : i32
    %21 = arith.extui %20 : i1 to i32
    %c0_i32_13 = arith.constant 0 : i32
    %22 = arith.cmpi ne, %21, %c0_i32_13 : i32
    scf.if %22 {
      %c0_14 = arith.constant 0 : index
      %c0_15 = arith.constant 0 : index
      %23 = vector.load %arg6[%c0_14, %c0_15] : memref<8x128xf32, #tpu.memory_space<vmem>>, vector<8x128xf32>
      %c0_16 = arith.constant 0 : index
      %c0_17 = arith.constant 0 : index
      %24 = vector.load %arg5[%c0_16, %c0_17] : memref<8x128xf32, #tpu.memory_space<vmem>>, vector<8x128xf32>
      tpu.vector_store %arg5[%c0_16, %c0_17], %23 {strides = array<i32>} : memref<8x128xf32, #tpu.memory_space<vmem>>, vector<8x128xf32>,
    } else {
    }
    return
  }
  func.func @transform_0(%arg0: i32, %arg1: i32) -> (i32, i32) {
    %c0_i32 = arith.constant 0 : i32
    %c0_i32_0 = arith.constant 0 : i32
    return %arg0, %c0_i32 : i32, i32
  }
  func.func @transform_1(%arg0: i32, %arg1: i32) -> (i32, i32) {
    %c0_i32 = arith.constant 0 : i32
    %c0_i32_0 = arith.constant 0 : i32
    return %c0_i32, %arg1 : i32, i32
  }
  func.func @transform_2(%arg0: i32, %arg1: i32) -> (i32, i32) {
    %c0_i32 = arith.constant 0 : i32
    %c0_i32_0 = arith.constant 0 : i32
    return %arg1, %c0_i32 : i32, i32
  }
  func.func @transform_3(%arg0: i32, %arg1: i32) -> (i32, i32) {
    %c0_i32 = arith.constant 0 : i32
    %c0_i32_0 = arith.constant 0 : i32
    return %arg0, %c0_i32 : i32, i32
  }
}

</mosaic_0001>

<bundles_post_ra>
// kernel: tpu_custom_call.1
= control target key start
LH: loop header
LB: loop body
LE: loop exit
PB: predicated region body
PF: predicated region fallthrough
CT: control target
= control target key end

     0   :  { %8 = vsyncpa [#allocation4], 0  ;;  %s975_s0 = inlined_call_operand.hbm [shape: f32[16,128], index: 0, kind: input, shape index: {}]   ;;  %s976_s1 = inlined_call_operand.hbm [shape: f32[128,256], index: 1, kind: input, shape index: {}]   ;;  %s977_s2 = inlined_call_operand.hbm [shape: f32[128,128], index: 2, kind: input, shape index: {}]   ;;  %s978_s3 = inlined_call_operand.hbm [shape: f32[16,128], index: 3, kind: output, shape index: {}]  }
   0x1   :  { %10 = vsyncpa [#allocation4 + $0x1], 0 }
   0x2   :  { %11 = vsyncpa [#allocation7], 0 }
   0x3   :  { %12 = vsyncpa [#allocation5], 0 }
   0x4   :  { %14 = vsyncpa [#allocation5 + $0x1], 0  ;;  %s824_s12 = smov 0   ;;  %s826_s13 = smov 0  }
   0x5   :  { %s828_s14 = smov 0   ;;  %s830_s15 = smov 0  }
   0x6   :  { %s832_s16 = smov 0   ;;  %s834_s17 = smov 0  }
   0x7 LB: > { %s511_s18 = sadd.s32 4294967295, %s796_s17   ;;  %p513_p0 = scmp.ge.s32.totalorder %s796_s17, 1  ;;  %s796_s17 = sphi %s834_s17, %s20_s17   ;;  %s792_s16 = sphi %s832_s16, %s988_s16   ;;  %s788_s15 = sphi %s830_s15, %s987_s15   ;;  %s784_s14 = sphi %s828_s14, %s986_s14   ;;  %s780_s13 = sphi %s826_s13, %s985_s13   ;;  %s776_s12 = sphi %s824_s12, %s984_s12  }
   0x8   : > { %p858_p1 = scmp.eq.s32.totalorder %s511_s18, 0  ;;  %p141_p2 = scmp.lt.s32.totalorder %s796_s17, 3 }
   0x9   : > { %s155_s22 = sshll.u32 %s976_s1, 4  ;;  %s798_s24 = smov [#allocation6]   ;;  %s156_s22 = int_to_ptr.hbm [resolvable:$true] %s155_s22 }
   0xa   : > { %p866_p3 = pnand %p513_p0, %p141_p2  ;;  %s157_s25 = sshll.u32 %s798_s24, 4  ;;  %s158_s25 = int_to_ptr.vmem [resolvable:$true] %s157_s25 }
   0xb   : > { %p516_p6 = scmp.ge.s32.totalorder %s796_s17, 2  ;;  %s172_s28 = sshll.u32 %s977_s2, 4  ;;  %s173_s28 = int_to_ptr.hbm [resolvable:$true] %s172_s28 }
   0xc   : > { %p541_p4 = pneg %p866_p3  ;;  %s799_s29 = smov 256  }
   0xd   : > { %s800_s30 = smov 16   ;;  %s801_s4 = smov [#allocation8]  }
   0xe   : > { %p542_p5 = pnand %p541_p4, %p858_p1  ;;  %s174_s5 = sshll.u32 %s801_s4, 4  ;;  %s175_s5 = int_to_ptr.vmem [resolvable:$true] %s174_s5 }
   0xf   : > { %s802_s6 = smov 128   ;;  %s803_s7 = smov 8  }
  0x10   : > { %544 = dma.hbm_to_vmem [thread:$0]  (!%p542_p5), %s156_s22, 4096, %s158_s25, [#allocation7], %s799_s29, %s799_s29, %s800_s30  }
  0x11   : > { %547 = dma.hbm_to_vmem [thread:$0]  (!%p542_p5), %s173_s28, 2048, %s175_s5, [#allocation7], %s802_s6, %s802_s6, %s803_s7  }
  0x12   : > { %s32_s8 = sadd.s32 1, %s792_s16  ;;  %s512_s9 = sadd.s32 4294967294, %s796_s17  }
  0x13   : > { %p34_p7 = scmp.ge.s32.totalorder %s32_s8, 2  ;;  %s39_s10 = sadd.s32 1, %s784_s14 }
  0x14   : > { %p46_p8 = scmp.ne.s32.totalorder %s784_s14, %s780_s13  ;;  %p47_p9 = scmp.eq.s32.totalorder %s796_s17, 0 }
  0x15   : > { %s990_s8 = smov (%p34_p7, %s32_s8), 0  ;;  %p52_p10 = scmp.ne.s32.totalorder %s780_s13, %s776_s12 }
  0x16   : > { %s36_s11 = ssub.s32 %s792_s16, %s990_s8  ;;  %p128_p11 = scmp.eq.s32.totalorder %s511_s18, 1 }
  0x17   : > { %p37_p12 = scmp.eq.s32.totalorder %s36_s11, 0  ;;  %p894_p13 = por %p858_p1, %p52_p10 }
  0x18   : > { %p898_p0 = por %p128_p11, %p46_p8  ;;  %p134_p2 = scmp.eq.s32.totalorder %s512_s9, 1 }
  0x19   : > { %s903_s22 = scalar_select %p37_p12, %s784_s14, %s39_s10  }
  0x1a   : > { %p48_p4 = por %p47_p9, %p46_p8  ;;  %p905_p5 = por %p134_p2, %p52_p10 }
  0x1b   : > { %s188_s25 = sand.u32 1, %s784_s14   ;;  %s518_s18 = sshll.u32 %s792_s16, 3 }
  0x1c   : > { %p558_p7 = scmp.lt.s32.totalorder %s796_s17, 2  ;;  %s517_s26 = sshll.u32 %s188_s25, 3 }
  0x1d   : > { %s196_s29 = scalar_lea.hbm %s975_s0, %s518_s18  ;;  %s192_s4 = scalar_lea.vmem [#allocation3], %s517_s26 }
  0x1e   : > { %s198_s30 = sshll.u32 %s196_s29, 4  ;;  %s200_s5 = sshll.u32 %s192_s4, 4  ;;  %s199_s30 = int_to_ptr.hbm [resolvable:$true] %s198_s30  ;;  %s201_s5 = int_to_ptr.vmem [resolvable:$true] %s200_s5 }
  0x1f   : > { %p549_p11 = pnand %p558_p7, %p48_p4  ;;  %s189_s6 = scalar_lea.sflag [#allocation4], %s188_s25 }
  0x20   : > { %209 = sbr.rel (%p866_p3) target bundleno = 365 (0x16d), region = 32  ;;  %s918_s7 = sand.u32 (!%p866_p3), 1, %s780_s13  }
  0x21   : > { %551 = dma.hbm_to_vmem [thread:$0]  (!%p549_p11), %s199_s30, 128, %s201_s5, %s189_s6  }
  0x22   : > { %s520_s9 = sshll.u32 (!%p866_p3), %s918_s7, 3  ;;  %s212_s10 = scalar_lea.sflag (!%p866_p3), [#allocation4], %s918_s7 }
  0x23   : > { %s924_s11 = scalar_lea.vmem (!%p866_p3), [#allocation3], %s520_s9 }
  0x25   : > { %763 = dma.done.wait (%p894_p13), %s212_s10, 128  }
  0x26   : > { %765 = vsyncadd (%p894_p13), %s212_s10, 4294967168 }
  0x27   : > { %767 = dma.done.wait (%p858_p1), [#allocation7], 6144  }
  0x28   : > { %769 = vsyncadd (%p858_p1), [#allocation7], 4294961152  ;;  %v287_v0 = vld [vmem:[#allocation6 + $0xf0] sm:$0xff]  ;;  %v285_v1 = vld [vmem:[#allocation6 + $0xe0] sm:$0xff]  ;;  %s526_s19 = sshll.u32 %s788_s15, 3  ;;  %s248_s18 = scalar_lea.vmem [#allocation9], %s520_s9 }
  0x29   : > { %289 = vmatpush.msra.mxu0 %v287_v0  ;;  %v283_v2 = vld [vmem:[#allocation6 + $0xd0] sm:$0xff]  ;;  %v281_v3 = vld [vmem:[#allocation6 + $0xc0] sm:$0xff]  ;;  %v288_v4 = vld [vmem:[#allocation6 + $0xf8] sm:$0xff]  ;;  %s405_s25 = scalar_lea.hbm %s978_s3, %s526_s19  ;;  %s407_s26 = sshll.u32 %s248_s18, 4  ;;  %s408_s26 = int_to_ptr.vmem [resolvable:$true] %s407_s26 }
  0x2a   : > { %v279_v5 = vld [vmem:[#allocation6 + $0xb0] sm:$0xff]  ;;  %309 = vmatpush.msra.mxu1 %v288_v4  ;;  %v286_v6 = vld [vmem:[#allocation6 + $0xe8] sm:$0xff]  ;;  %v284_v7 = vld [vmem:[#allocation6 + $0xd8] sm:$0xff]  ;;  %s409_s27 = sshll.u32 %s405_s25, 4  ;;  %s395_s28 = scalar_lea.sflag [#allocation5], %s918_s7  ;;  %s410_s27 = int_to_ptr.hbm [resolvable:$true] %s409_s27 }
  0x2b   : > { %290 = vmatpush.msra.mxu0 %v285_v1  ;;  %v277_v8 = vld [vmem:[#allocation6 + $0xa0] sm:$0xff]  ;;  %v282_v9 = vld [vmem:[#allocation6 + $0xc8] sm:$0xff]  ;;  %v275_v10 = vld [vmem:[#allocation6 + $0x90] sm:$0xff]  ;;  %s724_s29 = sshra.s32 %s410_s27, 4  ;;  %s730_s5 = scalar_lea.hbm %s978_s3, 16  ;;  %s725_s29 = int_to_ptr.hbm [resolvable:$true] %s724_s29 }
  0x2c   : > { %310 = vmatpush.msra.mxu1 %v286_v6  ;;  %v280_v11 = vld [vmem:[#allocation6 + $0xb8] sm:$0xff]  ;;  %v273_v12 = vld [vmem:[#allocation6 + $0x80] sm:$0xff]  ;;  %v278_v13 = vld [vmem:[#allocation6 + $0xa8] sm:$0xff]  ;;  %s726_s30 = scalar_lea.hbm %s725_s29, 8  ;;  %p731_p9 = scmp.lt.s32.totalorder %s725_s29, %s978_s3 }
  0x2d   : > { %291 = vmatpush.msra.mxu0 %v283_v2  ;;  %v271_v14 = vld [vmem:[#allocation6 + $0x70] sm:$0xff]  ;;  %v276_v15 = vld [vmem:[#allocation6 + $0x98] sm:$0xff]  ;;  %v269_v16 = vld [vmem:[#allocation6 + $0x60] sm:$0xff]  ;;  %p727_p1 = scmp.ne.s32.totalorder %s725_s29, %s726_s30  ;;  %p732_p10 = scmp.lt.s32.totalorder %s730_s5, %s726_s30 }
  0x2e   : > { %311 = vmatpush.msra.mxu1 %v284_v7  ;;  %v274_v17 = vld [vmem:[#allocation6 + $0x88] sm:$0xff]  ;;  %v267_v18 = vld [vmem:[#allocation6 + $0x50] sm:$0xff]  ;;  %v272_v19 = vld [vmem:[#allocation6 + $0x78] sm:$0xff] }
  0x2f   : > { %292 = vmatpush.msra.mxu0 %v281_v3  ;;  %v265_v20 = vld [vmem:[#allocation6 + $0x40] sm:$0xff]  ;;  %v270_v21 = vld [vmem:[#allocation6 + $0x68] sm:$0xff]  ;;  %v263_v22 = vld [vmem:[#allocation6 + $0x30] sm:$0xff]  ;;  %p728_p3 = pnand %p727_p1, %p898_p0  ;;  %p733_p12 = por %p732_p10, %p731_p9 }
  0x30   : > { %312 = vmatpush.msra.mxu1 %v282_v9  ;;  %v268_v23 = vld [vmem:[#allocation6 + $0x58] sm:$0xff]  ;;  %v261_v24 = vld [vmem:[#allocation6 + $0x20] sm:$0xff]  ;;  %v266_v25 = vld [vmem:[#allocation6 + $0x48] sm:$0xff] }
  0x31   : > { %293 = vmatpush.msra.mxu0 %v279_v5  ;;  %v259_v26 = vld [vmem:[#allocation6 + $0x10] sm:$0xff]  ;;  %v264_v27 = vld [vmem:[#allocation6 + $0x38] sm:$0xff]  ;;  %v257_v28 = vld [vmem:[#allocation6] sm:$0xff]  ;;  %p729_p8 = pneg %p728_p3 }
  0x32   : > { %313 = vmatpush.msra.mxu1 %v280_v11  ;;  %v256_v29 = vld [vmem:[%s924_s11] sm:$0xff]  ;;  %v262_v30 = vld [vmem:[#allocation6 + $0x28] sm:$0xff]  ;;  %v363_v36 = vld [vmem:[#allocation8 + $0x60] sm:$0xff] }
  0x33   : > { %294 = vmatpush.msra.mxu0 %v277_v8  ;;  %v260_v31 = vld [vmem:[#allocation6 + $0x18] sm:$0xff]  ;;  %v258_v32 = vld [vmem:[#allocation6 + $0x8] sm:$0xff]  ;;  %v365_v34 = vld [vmem:[#allocation8 + $0x70] sm:$0xff]  ;;  %p734_p13 = pnand %p733_p12, %p729_p8 }
  0x34   : > { %314 = vmatpush.msra.mxu1 %v278_v13  ;;  %v366_v33 = vld [vmem:[#allocation8 + $0x78] sm:$0xff]  ;;  %v364_v35 = vld [vmem:[#allocation8 + $0x68] sm:$0xff]  ;;  %v361_v38 = vld [vmem:[#allocation8 + $0x50] sm:$0xff] }
  0x35   : > { %295 = vmatpush.msra.mxu0 %v275_v10  ;;  %367 = vmatpush.msra.mxu2 %v366_v33  ;;  %v362_v37 = vld [vmem:[#allocation8 + $0x58] sm:$0xff]  ;;  %v360_v39 = vld [vmem:[#allocation8 + $0x48] sm:$0xff]  ;;  %v359_v40 = vld [vmem:[#allocation8 + $0x40] sm:$0xff] }
  0x36   : > { %315 = vmatpush.msra.mxu1 %v276_v15  ;;  %v358_v41 = vld [vmem:[#allocation8 + $0x38] sm:$0xff]  ;;  %v357_v42 = vld [vmem:[#allocation8 + $0x30] sm:$0xff]  ;;  %v356_v43 = vld [vmem:[#allocation8 + $0x28] sm:$0xff] }
  0x37   : > { %296 = vmatpush.msra.mxu0 %v273_v12  ;;  %368 = vmatpush.msra.mxu2 %v365_v34  ;;  %v355_v44 = vld [vmem:[#allocation8 + $0x20] sm:$0xff]  ;;  %v354_v45 = vld [vmem:[#allocation8 + $0x18] sm:$0xff]  ;;  %v353_v46 = vld [vmem:[#allocation8 + $0x10] sm:$0xff] }
  0x38   : > { %316 = vmatpush.msra.mxu1 %v274_v17  ;;  %v352_v47 = vld [vmem:[#allocation8 + $0x8] sm:$0xff]  ;;  %v351_v48 = vld [vmem:[#allocation8] sm:$0xff] }
  0x39   : > { %297 = vmatpush.msra.mxu0 %v271_v14  ;;  %369 = vmatpush.msra.mxu2 %v364_v35 }
  0x3a   : > { %317 = vmatpush.msra.mxu1 %v272_v19 }
  0x3b   : > { %298 = vmatpush.msra.mxu0 %v269_v16  ;;  %370 = vmatpush.msra.mxu2 %v363_v36 }
  0x3c   : > { %318 = vmatpush.msra.mxu1 %v270_v21 }
  0x3d   : > { %299 = vmatpush.msra.mxu0 %v267_v18  ;;  %371 = vmatpush.msra.mxu2 %v362_v37 }
  0x3e   : > { %319 = vmatpush.msra.mxu1 %v268_v23 }
  0x3f   : > { %300 = vmatpush.msra.mxu0 %v265_v20  ;;  %372 = vmatpush.msra.mxu2 %v361_v38 }
  0x40   : > { %320 = vmatpush.msra.mxu1 %v266_v25 }
  0x41   : > { %301 = vmatpush.msra.mxu0 %v263_v22  ;;  %373 = vmatpush.msra.mxu2 %v360_v39 }
  0x42   : > { %321 = vmatpush.msra.mxu1 %v264_v27 }
  0x43   : > { %302 = vmatpush.msra.mxu0 %v261_v24  ;;  %374 = vmatpush.msra.mxu2 %v359_v40 }
  0x44   : > { %322 = vmatpush.msra.mxu1 %v262_v30 }
  0x45   : > { %303 = vmatpush.msra.mxu0 %v259_v26  ;;  %375 = vmatpush.msra.mxu2 %v358_v41 }
  0x46   : > { %323 = vmatpush.msra.mxu1 %v260_v31 }
  0x47   : > { %304 = vmatpush.msra.mxu0 %v257_v28  ;;  %376 = vmatpush.msra.mxu2 %v357_v42 }
  0x48   : > { %305 = vmatmul.f32.vlgmr.msra.gmra.mxu0 %v256_v29  ;;  %324 = vmatpush.msra.mxu1 %v258_v32 }
  0x49   : > { %325 = vmatmul.f32.vlgmr.msra.gmra.mxu1 %v256_v29  ;;  %377 = vmatpush.msra.mxu2 %v356_v43 }
  0x4b   : > { %378 = vmatpush.msra.mxu2 %v355_v44 }
  0x4d   : > { %379 = vmatpush.msra.mxu2 %v354_v45 }
  0x4f   : > { %380 = vmatpush.msra.mxu2 %v353_v46 }
  0x51   : > { %381 = vmatpush.msra.mxu2 %v352_v47 }
  0x53   : > { %382 = vmatpush.msra.mxu2 %v351_v48 }
  0xc5   : > { %v306_v49 = vpop.f32.mrf.mxu0 }
  0xc6   : > { %v524_v50 = vmul.f32 -1.442695, %v306_v49  ;;  %v326_v63 = vpop.f32.mrf.mxu1 }
  0xc8   : > { %616 = vpow2.f32 %v524_v50 }
  0xce   : > { %v617_v51 = vpop.eup %616 }
  0xcf   : > { %v332_v52 = vadd.f32 1.0, %v617_v51 }
  0xd1   : > { %618 = vrcp.f32 %v332_v52  ;;  %v344_v56 = vand.u32 2147483648, %v332_v52  ;;  %v342_v58 = vand.u32 2147483647, %v332_v52  ;;  %vm338_vm1 = vweird.f32 %v332_v52 }
  0xd3   : > { %v345_v60 = vor.u32 1.1754944e-38, %v344_v56  ;;  %vm343_vm3 = vcmp.eq.f32.partialorder %v342_v58, 8.507059e+37 }
  0xd7   : > { %v619_v53 = vpop.eup %618 }
  0xd8   : > { %v334_v54 = vmul.f32 %v619_v53, %v332_v52  ;;  %vm339_vm0 = vweird.f32 %v619_v53 }
  0xd9   : > { %vm340_vm2 = vmor %vm338_vm1, %vm339_vm0 }
  0xda   : > { %v335_v55 = vsub.f32 1.0, %v334_v54 }
  0xdc   : > { %v336_v57 = vmul.f32 %v619_v53, %v335_v55 }
  0xde   : > { %v337_v59 = vadd.f32 %v619_v53, %v336_v57 }
  0xe0   : > { %v341_v61 = vsel %vm340_vm2, %v619_v53, %v337_v59 }
  0xe1   : > { %v346_v62 = vsel %vm343_vm3, %v345_v60, %v341_v61 }
  0xe2   : > { %v348_v0 = vmul.f32 %v346_v62, %v306_v49 }
  0xe4   : > { %v349_v1 = vmul.f32 %v348_v0, %v326_v63 }
  0xe6   : > { %383 = vmatmul.f32.vlgmr.msra.gmra.mxu2 %v349_v1 }
 0x169   : > { %v384_v2 = vpop.f32.mrf.mxu2 }
 0x16a   : > { %393 = vst [vmem:[%s248_s18] sm:$0xff] %v384_v2 }
 0x16b   : > { %737 = shalt.err (!%p734_p13)
}
 0x16c   : > { %539 = dma.vmem_to_hbm [thread:$0]  (%p898_p0), %s408_s26, 128, %s410_s27, %s395_s28  }
 0x16d PF: > { %s421_s7 = sand.u32 1, %s776_s12   ;;  %p553_p2 = pnand %p516_p6, %p905_p5 }
 0x16e   : > { %s422_s10 = scalar_lea.sflag [#allocation5], %s421_s7 }
 0x16f   : > { %p554_p4 = pneg %p553_p2 }
 0x171   : > { %771 = dma.done.wait (%p554_p4), %s422_s10, 128  }
 0x172   : > { %773 = vsyncadd (%p554_p4), %s422_s10, 4294967168  ;;  %s20_s17 = sadd.s32 1, %s796_s17   ;;  %s984_s12 = smov %s780_s13 }
 0x173   : > { %p17_p7 = scmp.ge.s32.totalorder %s20_s17, 4   ;;  %s985_s13 = smov %s784_s14 }
 0x174   : > { %s986_s14 = smov %s903_s22  ;;  %s987_s15 = smov %s792_s16 }
 0x175   : > { %s988_s16 = smov %s990_s8  ;;  %19 = sbr.rel (!%p17_p7) target bundleno = 7 (0x7), region = 95 }
 0x17a   :  { %428 = vsyncpa [#allocation4], 1 }
 0x17b   :  { %430 = vsyncpa [#allocation4 + $0x1], 1 }
 0x17c   :  { %431 = vsyncpa [#allocation7], 1 }
 0x17d   :  { %432 = vsyncpa [#allocation5], 1 }
 0x17e   :  { %434 = vsyncpa [#allocation5 + $0x1], 1 }

</bundles_post_ra>
